<compile_context>
chip_gen: v7x
topology: tpu7x:2x2x1
jax: 0.10.0
libtpu: 0.0.40
codegen_flags: <defaults>
</compile_context>

<pallas_src>
import functools
import math

import jax
import jax.numpy as jnp
from jax.experimental import pallas as pl
from jax.experimental.pallas import tpu as pltpu


# ------------------------------ fused kernel -------------------------------


def _fused_attention_kernel(q_ref, k_ref, v_ref,
                            wq_ref, bq_ref, wk_ref, bk_ref, wv_ref, bv_ref,
                            wo_ref, bo_ref, o_ref, *, num_heads, scale):
    # One batch element per grid step.
    qx = q_ref[0]                      # (Nq, E)
    kx = k_ref[0]                      # (Nk, E)
    vx = v_ref[0]                      # (Nk, E)

    # Projections (MXU, fp32 accumulate). Fold the 1/sqrt(d) scale into the
    # queries so it is applied to (Nq, D) instead of every (Nq, Nk) score tile.
    qh = (jnp.dot(qx, wq_ref[...], preferred_element_type=jnp.float32)
          + bq_ref[...]) * scale
    kh = jnp.dot(kx, wk_ref[...], preferred_element_type=jnp.float32) + bk_ref[...]
    vh = jnp.dot(vx, wv_ref[...], preferred_element_type=jnp.float32) + bv_ref[...]

    D = qh.shape[-1]
    d = D // num_heads

    # Per-head softmax attention; heads are static lane slices of the projected
    # activations, merged back on the lane axis (lane-dense, no transposes).
    head_outs = []
    for h in range(num_heads):
        qs = qh[:, h * d:(h + 1) * d]                          # (Nq, d)
        ks = kh[:, h * d:(h + 1) * d]                          # (Nk, d)
        vs = vh[:, h * d:(h + 1) * d]                          # (Nk, d)
        s = jax.lax.dot_general(
            qs, ks, (((1,), (1,)), ((), ())),
            preferred_element_type=jnp.float32)                # (Nq, Nk)
        s = s - jnp.max(s, axis=-1, keepdims=True)
        p = jnp.exp(s)
        p = p * pl.reciprocal(jnp.sum(p, axis=-1, keepdims=True), approx=True)
        head_outs.append(
            jnp.dot(p, vs, preferred_element_type=jnp.float32))  # (Nq, d)
    merged = jnp.concatenate(head_outs, axis=-1)               # (Nq, D)

    # Output projection, written lane-dense as (Nq, E).
    out = jnp.dot(merged, wo_ref[...],
                  preferred_element_type=jnp.float32) + bo_ref[...]
    o_ref[0] = out.astype(o_ref.dtype)


# ------------------------------- wrapper ------------------------------------


def attention(q, k, v, params, num_heads):
    """Fused Attention forward: softmax((xWq)(xWk)^T/sqrt(d)) (xWv) Wo + bo."""
    B, Nq, E = q.shape
    _, Nk, _ = k.shape
    D = params["wq"].shape[1]           # internal dims = E // downsample_rate
    d = D // num_heads

    kernel = functools.partial(
        _fused_attention_kernel, num_heads=num_heads, scale=1.0 / math.sqrt(d))

    def full2d(arr):  # whole weight / bias resident across the batch grid
        return pl.BlockSpec(arr.shape, lambda b: (0, 0))

    return pl.pallas_call(
        kernel,
        out_shape=jax.ShapeDtypeStruct((B, Nq, E), q.dtype),
        grid=(B,),
        in_specs=[
            pl.BlockSpec((1, Nq, E), lambda b: (b, 0, 0)),   # q
            pl.BlockSpec((1, Nk, E), lambda b: (b, 0, 0)),   # k
            pl.BlockSpec((1, Nk, E), lambda b: (b, 0, 0)),   # v
            full2d(params["wq"]), full2d(params["bq"]),
            full2d(params["wk"]), full2d(params["bk"]),
            full2d(params["wv"]), full2d(params["bv"]),
            full2d(params["wo"]), full2d(params["bo"]),
        ],
        out_specs=pl.BlockSpec((1, Nq, E), lambda b: (b, 0, 0)),
        compiler_params=pltpu.CompilerParams(
            dimension_semantics=("parallel",)),
    )(q, k, v,
      params["wq"], params["bq"], params["wk"], params["bk"],
      params["wv"], params["bv"], params["wo"], params["bo"])


# ------------------------- pure-JAX reference -------------------------------


def attention_ref(q, k, v, params, num_heads):
    B, Nq, E = q.shape
    _, Nk, _ = k.shape
    D = params["wq"].shape[1]
    d = D // num_heads

    def proj(x, w, b):
        return x @ w + b

    qh = proj(q, params["wq"], params["bq"]).reshape(B, Nq, num_heads, d).transpose(0, 2, 1, 3)
    kh = proj(k, params["wk"], params["bk"]).reshape(B, Nk, num_heads, d).transpose(0, 2, 1, 3)
    vh = proj(v, params["wv"], params["bv"]).reshape(B, Nk, num_heads, d).transpose(0, 2, 1, 3)
    s = jnp.einsum("bhqd,bhkd->bhqk", qh, kh) / math.sqrt(d)
    p = jax.nn.softmax(s, axis=-1)
    o = jnp.einsum("bhqk,bhkd->bhqd", p, vh)
    o = o.transpose(0, 2, 1, 3).reshape(B, Nq, D)
    return o @ params["wo"] + params["bo"]


# ------------------------------- param init ---------------------------------


def _init_linear(key, din, dout, scale=0.05):
    k1, k2 = jax.random.split(key)
    w = jax.random.normal(k1, (din, dout), jnp.float32) * scale
    b = jax.random.normal(k2, (1, dout), jnp.float32) * scale
    return w, b


def init_attention_params(key, embed_dims, downsample_rate):
    internal = embed_dims // downsample_rate
    ks = jax.random.split(key, 4)
    wq, bq = _init_linear(ks[0], embed_dims, internal)
    wk, bk = _init_linear(ks[1], embed_dims, internal)
    wv, bv = _init_linear(ks[2], embed_dims, internal)
    wo, bo = _init_linear(ks[3], internal, embed_dims)
    return dict(wq=wq, bq=bq, wk=wk, bk=bk, wv=wv, bv=bv, wo=wo, bo=bo)


# ---------------------------------- main -------------------------------------


if __name__ == "__main__":
    B, Nq, Nk = 2, 8, 64
    embed_dims = 32
    num_heads = 2
    downsample_rate = 2          # internal dims = 16, head_dim = 8

    root = jax.random.PRNGKey(0)
    kq, kk, kv, kp = jax.random.split(root, 4)

    q = jax.random.normal(kq, (B, Nq, embed_dims), jnp.float32)
    k = jax.random.normal(kk, (B, Nk, embed_dims), jnp.float32)
    v = jax.random.normal(kv, (B, Nk, embed_dims), jnp.float32)
    params = init_attention_params(kp, embed_dims, downsample_rate)

    fwd = jax.jit(functools.partial(attention, num_heads=num_heads))
    out = fwd(q, k, v, params)
    jax.block_until_ready(out)

    ref = attention_ref(q, k, v, params, num_heads)
    assert out.shape == (B, Nq, embed_dims)
    assert bool(jnp.all(jnp.isfinite(out)))
    assert bool(jnp.allclose(out, ref, atol=1e-2, rtol=1e-2)), (
        float(jnp.max(jnp.abs(out - ref))))
    print("KERNEL_OK")
</pallas_src>

<mosaic_0001>
module attributes {stable_mosaic.version = 11 : i64} {
  func.func @_fused_attention_kernel(%arg0: i32, %arg1: memref<1x8x32xf32, #tpu.memory_space<vmem>>, %arg2: memref<1x64x32xf32, #tpu.memory_space<vmem>>, %arg3: memref<1x64x32xf32, #tpu.memory_space<vmem>>, %arg4: memref<32x16xf32, #tpu.memory_space<vmem>>, %arg5: memref<1x16xf32, #tpu.memory_space<vmem>>, %arg6: memref<32x16xf32, #tpu.memory_space<vmem>>, %arg7: memref<1x16xf32, #tpu.memory_space<vmem>>, %arg8: memref<32x16xf32, #tpu.memory_space<vmem>>, %arg9: memref<1x16xf32, #tpu.memory_space<vmem>>, %arg10: memref<16x32xf32, #tpu.memory_space<vmem>>, %arg11: memref<1x32xf32, #tpu.memory_space<vmem>>, %arg12: memref<1x8x32xf32, #tpu.memory_space<vmem>>) attributes {dimension_semantics = [#tpu.dimension_semantics<parallel>], iteration_bounds = array<i64: 2>, scalar_prefetch = 0 : i64, scratch_operands = 0 : i64, tpu.core_type = #tpu.core_type<tc>, window_params = [{transform_indices = @transform_0, window_bounds = array<i64: 1, 8, 32>}, {transform_indices = @transform_1, window_bounds = array<i64: 1, 64, 32>}, {transform_indices = @transform_2, window_bounds = array<i64: 1, 64, 32>}, {pipeline_mode = #tpu.pipeline_mode<synchronous>, transform_indices = @transform_3, window_bounds = array<i64: 32, 16>}, {pipeline_mode = #tpu.pipeline_mode<synchronous>, transform_indices = @transform_4, window_bounds = array<i64: 1, 16>}, {pipeline_mode = #tpu.pipeline_mode<synchronous>, transform_indices = @transform_5, window_bounds = array<i64: 32, 16>}, {pipeline_mode = #tpu.pipeline_mode<synchronous>, transform_indices = @transform_6, window_bounds = array<i64: 1, 16>}, {pipeline_mode = #tpu.pipeline_mode<synchronous>, transform_indices = @transform_7, window_bounds = array<i64: 32, 16>}, {pipeline_mode = #tpu.pipeline_mode<synchronous>, transform_indices = @transform_8, window_bounds = array<i64: 1, 16>}, {pipeline_mode = #tpu.pipeline_mode<synchronous>, transform_indices = @transform_9, window_bounds = array<i64: 16, 32>}, {pipeline_mode = #tpu.pipeline_mode<synchronous>, transform_indices = @transform_10, window_bounds = array<i64: 1, 32>}, {transform_indices = @transform_11, window_bounds = array<i64: 1, 8, 32>}]} {
    %c0 = arith.constant 0 : index
    %c0_0 = arith.constant 0 : index
    %c0_1 = arith.constant 0 : index
    %0 = vector.load %arg1[%c0, %c0_0, %c0_1] : memref<1x8x32xf32, #tpu.memory_space<vmem>>, vector<1x8x32xf32>
    %1 = vector.shape_cast %0 : vector<1x8x32xf32> to vector<8x32xf32>
    %c0_2 = arith.constant 0 : index
    %c0_3 = arith.constant 0 : index
    %c0_4 = arith.constant 0 : index
    %2 = vector.load %arg2[%c0_2, %c0_3, %c0_4] : memref<1x64x32xf32, #tpu.memory_space<vmem>>, vector<1x64x32xf32>
    %3 = vector.shape_cast %2 : vector<1x64x32xf32> to vector<64x32xf32>
    %c0_5 = arith.constant 0 : index
    %c0_6 = arith.constant 0 : index
    %c0_7 = arith.constant 0 : index
    %4 = vector.load %arg3[%c0_5, %c0_6, %c0_7] : memref<1x64x32xf32, #tpu.memory_space<vmem>>, vector<1x64x32xf32>
    %5 = vector.shape_cast %4 : vector<1x64x32xf32> to vector<64x32xf32>
    %c0_8 = arith.constant 0 : index
    %c0_9 = arith.constant 0 : index
    %6 = vector.load %arg4[%c0_8, %c0_9] : memref<32x16xf32, #tpu.memory_space<vmem>>, vector<32x16xf32>
    %cst = arith.constant dense<0.000000e+00> : vector<8x16xf32>
    %7 = tpu.matmul %1, %6, %cst {dimension_numbers = #tpu.dot_dimension_numbers<[1], [0], [0], [1], [0, 0, 1, 1], [], []>} : vector<8x32xf32>, vector<32x16xf32>, vector<8x16xf32> -> vector<8x16xf32>
    %c0_10 = arith.constant 0 : index
    %c0_11 = arith.constant 0 : index
    %8 = vector.load %arg5[%c0_10, %c0_11] : memref<1x16xf32, #tpu.memory_space<vmem>>, vector<1x16xf32>
    %9 = vector.broadcast %8 : vector<1x16xf32> to vector<8x16xf32>
    %10 = arith.addf %7, %9 : vector<8x16xf32>
    %cst_12 = arith.constant 0.353553385 : f32
    %11 = vector.broadcast %cst_12 : f32 to vector<8x16xf32>
    %12 = arith.mulf %10, %11 : vector<8x16xf32>
    %c0_13 = arith.constant 0 : index
    %c0_14 = arith.constant 0 : index
    %13 = vector.load %arg6[%c0_13, %c0_14] : memref<32x16xf32, #tpu.memory_space<vmem>>, vector<32x16xf32>
    %cst_15 = arith.constant dense<0.000000e+00> : vector<64x16xf32>
    %14 = tpu.matmul %3, %13, %cst_15 {dimension_numbers = #tpu.dot_dimension_numbers<[1], [0], [0], [1], [0, 0, 1, 1], [], []>} : vector<64x32xf32>, vector<32x16xf32>, vector<64x16xf32> -> vector<64x16xf32>
    %c0_16 = arith.constant 0 : index
    %c0_17 = arith.constant 0 : index
    %15 = vector.load %arg7[%c0_16, %c0_17] : memref<1x16xf32, #tpu.memory_space<vmem>>, vector<1x16xf32>
    %16 = vector.broadcast %15 : vector<1x16xf32> to vector<64x16xf32>
    %17 = arith.addf %14, %16 : vector<64x16xf32>
    %c0_18 = arith.constant 0 : index
    %c0_19 = arith.constant 0 : index
    %18 = vector.load %arg8[%c0_18, %c0_19] : memref<32x16xf32, #tpu.memory_space<vmem>>, vector<32x16xf32>
    %cst_20 = arith.constant dense<0.000000e+00> : vector<64x16xf32>
    %19 = tpu.matmul %5, %18, %cst_20 {dimension_numbers = #tpu.dot_dimension_numbers<[1], [0], [0], [1], [0, 0, 1, 1], [], []>} : vector<64x32xf32>, vector<32x16xf32>, vector<64x16xf32> -> vector<64x16xf32>
    %c0_21 = arith.constant 0 : index
    %c0_22 = arith.constant 0 : index
    %20 = vector.load %arg9[%c0_21, %c0_22] : memref<1x16xf32, #tpu.memory_space<vmem>>, vector<1x16xf32>
    %21 = vector.broadcast %20 : vector<1x16xf32> to vector<64x16xf32>
    %22 = arith.addf %19, %21 : vector<64x16xf32>
    %23 = vector.extract_strided_slice %12 {offsets = [0, 0], sizes = [8, 8], strides = [1, 1]} : vector<8x16xf32> to vector<8x8xf32>
    %24 = vector.extract_strided_slice %17 {offsets = [0, 0], sizes = [64, 8], strides = [1, 1]} : vector<64x16xf32> to vector<64x8xf32>
    %25 = vector.extract_strided_slice %22 {offsets = [0, 0], sizes = [64, 8], strides = [1, 1]} : vector<64x16xf32> to vector<64x8xf32>
    %cst_23 = arith.constant dense<0.000000e+00> : vector<8x64xf32>
    %26 = tpu.matmul %23, %24, %cst_23 {dimension_numbers = #tpu.dot_dimension_numbers<[1], [1], [0], [0], [0, 0, 1, 0], [], []>} : vector<8x8xf32>, vector<64x8xf32>, vector<8x64xf32> -> vector<8x64xf32>
    %cst_24 = arith.constant dense<0xFF800000> : vector<8xf32>
    %27 = vector.multi_reduction <maximumf>, %26, %cst_24 [1] : vector<8x64xf32> to vector<8xf32>
    %28 = vector.shape_cast %27 : vector<8xf32> to vector<8x1xf32>
    %29 = vector.broadcast %28 : vector<8x1xf32> to vector<8x64xf32>
    %30 = arith.subf %26, %29 : vector<8x64xf32>
    %31 = math.exp %30 : vector<8x64xf32>
    %cst_25 = arith.constant dense<0.000000e+00> : vector<8xf32>
    %32 = vector.multi_reduction <add>, %31, %cst_25 [1] : vector<8x64xf32> to vector<8xf32>
    %33 = vector.shape_cast %32 : vector<8xf32> to vector<8x1xf32>
    %34 = tpu.reciprocal %33 {approx = true} : vector<8x1xf32> -> vector<8x1xf32>
    %35 = vector.broadcast %34 : vector<8x1xf32> to vector<8x64xf32>
    %36 = arith.mulf %31, %35 : vector<8x64xf32>
    %cst_26 = arith.constant dense<0.000000e+00> : vector<8x8xf32>
    %37 = tpu.matmul %36, %25, %cst_26 {dimension_numbers = #tpu.dot_dimension_numbers<[1], [0], [0], [1], [0, 0, 1, 1], [], []>} : vector<8x64xf32>, vector<64x8xf32>, vector<8x8xf32> -> vector<8x8xf32>
    %38 = vector.extract_strided_slice %12 {offsets = [0, 8], sizes = [8, 8], strides = [1, 1]} : vector<8x16xf32> to vector<8x8xf32>
    %39 = vector.extract_strided_slice %17 {offsets = [0, 8], sizes = [64, 8], strides = [1, 1]} : vector<64x16xf32> to vector<64x8xf32>
    %40 = vector.extract_strided_slice %22 {offsets = [0, 8], sizes = [64, 8], strides = [1, 1]} : vector<64x16xf32> to vector<64x8xf32>
    %cst_27 = arith.constant dense<0.000000e+00> : vector<8x64xf32>
    %41 = tpu.matmul %38, %39, %cst_27 {dimension_numbers = #tpu.dot_dimension_numbers<[1], [1], [0], [0], [0, 0, 1, 0], [], []>} : vector<8x8xf32>, vector<64x8xf32>, vector<8x64xf32> -> vector<8x64xf32>
    %cst_28 = arith.constant dense<0xFF800000> : vector<8xf32>
    %42 = vector.multi_reduction <maximumf>, %41, %cst_28 [1] : vector<8x64xf32> to vector<8xf32>
    %43 = vector.shape_cast %42 : vector<8xf32> to vector<8x1xf32>
    %44 = vector.broadcast %43 : vector<8x1xf32> to vector<8x64xf32>
    %45 = arith.subf %41, %44 : vector<8x64xf32>
    %46 = math.exp %45 : vector<8x64xf32>
    %cst_29 = arith.constant dense<0.000000e+00> : vector<8xf32>
    %47 = vector.multi_reduction <add>, %46, %cst_29 [1] : vector<8x64xf32> to vector<8xf32>
    %48 = vector.shape_cast %47 : vector<8xf32> to vector<8x1xf32>
    %49 = tpu.reciprocal %48 {approx = true} : vector<8x1xf32> -> vector<8x1xf32>
    %50 = vector.broadcast %49 : vector<8x1xf32> to vector<8x64xf32>
    %51 = arith.mulf %46, %50 : vector<8x64xf32>
    %cst_30 = arith.constant dense<0.000000e+00> : vector<8x8xf32>
    %52 = tpu.matmul %51, %40, %cst_30 {dimension_numbers = #tpu.dot_dimension_numbers<[1], [0], [0], [1], [0, 0, 1, 1], [], []>} : vector<8x64xf32>, vector<64x8xf32>, vector<8x8xf32> -> vector<8x8xf32>
    %53 = tpu.concatenate %37, %52 in 1 : vector<8x8xf32>, vector<8x8xf32> -> vector<8x16xf32>
    %c0_31 = arith.constant 0 : index
    %c0_32 = arith.constant 0 : index
    %54 = vector.load %arg10[%c0_31, %c0_32] : memref<16x32xf32, #tpu.memory_space<vmem>>, vector<16x32xf32>
    %cst_33 = arith.constant dense<0.000000e+00> : vector<8x32xf32>
    %55 = tpu.matmul %53, %54, %cst_33 {dimension_numbers = #tpu.dot_dimension_numbers<[1], [0], [0], [1], [0, 0, 1, 1], [], []>} : vector<8x16xf32>, vector<16x32xf32>, vector<8x32xf32> -> vector<8x32xf32>
    %c0_34 = arith.constant 0 : index
    %c0_35 = arith.constant 0 : index
    %56 = vector.load %arg11[%c0_34, %c0_35] : memref<1x32xf32, #tpu.memory_space<vmem>>, vector<1x32xf32>
    %57 = vector.broadcast %56 : vector<1x32xf32> to vector<8x32xf32>
    %58 = arith.addf %55, %57 : vector<8x32xf32>
    %c0_36 = arith.constant 0 : index
    %c0_37 = arith.constant 0 : index
    %c0_38 = arith.constant 0 : index
    %59 = vector.load %arg12[%c0_36, %c0_37, %c0_38] : memref<1x8x32xf32, #tpu.memory_space<vmem>>, vector<1x8x32xf32>
    %60 = vector.shape_cast %59 : vector<1x8x32xf32> to vector<8x32xf32>
    %61 = vector.shape_cast %58 : vector<8x32xf32> to vector<1x8x32xf32>
    tpu.vector_store %arg12[%c0_36, %c0_37, %c0_38], %61 {strides = array<i32>} : memref<1x8x32xf32, #tpu.memory_space<vmem>>, vector<1x8x32xf32>,
    return
  }
  func.func @transform_0(%arg0: i32) -> (i32, i32, i32) {
    %c0_i32 = arith.constant 0 : i32
    %c0_i32_0 = arith.constant 0 : i32
    %c0_i32_1 = arith.constant 0 : i32
    return %arg0, %c0_i32, %c0_i32_0 : i32, i32, i32
  }
  func.func @transform_1(%arg0: i32) -> (i32, i32, i32) {
    %c0_i32 = arith.constant 0 : i32
    %c0_i32_0 = arith.constant 0 : i32
    %c0_i32_1 = arith.constant 0 : i32
    return %arg0, %c0_i32, %c0_i32_0 : i32, i32, i32
  }
  func.func @transform_2(%arg0: i32) -> (i32, i32, i32) {
    %c0_i32 = arith.constant 0 : i32
    %c0_i32_0 = arith.constant 0 : i32
    %c0_i32_1 = arith.constant 0 : i32
    return %arg0, %c0_i32, %c0_i32_0 : i32, i32, i32
  }
  func.func @transform_3(%arg0: i32) -> (i32, i32) {
    %c0_i32 = arith.constant 0 : i32
    %c0_i32_0 = arith.constant 0 : i32
    %c0_i32_1 = arith.constant 0 : i32
    return %c0_i32, %c0_i32_0 : i32, i32
  }
  func.func @transform_4(%arg0: i32) -> (i32, i32) {
    %c0_i32 = arith.constant 0 : i32
    %c0_i32_0 = arith.constant 0 : i32
    %c0_i32_1 = arith.constant 0 : i32
    return %c0_i32, %c0_i32_0 : i32, i32
  }
  func.func @transform_5(%arg0: i32) -> (i32, i32) {
    %c0_i32 = arith.constant 0 : i32
    %c0_i32_0 = arith.constant 0 : i32
    %c0_i32_1 = arith.constant 0 : i32
    return %c0_i32, %c0_i32_0 : i32, i32
  }
  func.func @transform_6(%arg0: i32) -> (i32, i32) {
    %c0_i32 = arith.constant 0 : i32
    %c0_i32_0 = arith.constant 0 : i32
    %c0_i32_1 = arith.constant 0 : i32
    return %c0_i32, %c0_i32_0 : i32, i32
  }
  func.func @transform_7(%arg0: i32) -> (i32, i32) {
    %c0_i32 = arith.constant 0 : i32
    %c0_i32_0 = arith.constant 0 : i32
    %c0_i32_1 = arith.constant 0 : i32
    return %c0_i32, %c0_i32_0 : i32, i32
  }
  func.func @transform_8(%arg0: i32) -> (i32, i32) {
    %c0_i32 = arith.constant 0 : i32
    %c0_i32_0 = arith.constant 0 : i32
    %c0_i32_1 = arith.constant 0 : i32
    return %c0_i32, %c0_i32_0 : i32, i32
  }
  func.func @transform_9(%arg0: i32) -> (i32, i32) {
    %c0_i32 = arith.constant 0 : i32
    %c0_i32_0 = arith.constant 0 : i32
    %c0_i32_1 = arith.constant 0 : i32
    return %c0_i32, %c0_i32_0 : i32, i32
  }
  func.func @transform_10(%arg0: i32) -> (i32, i32) {
    %c0_i32 = arith.constant 0 : i32
    %c0_i32_0 = arith.constant 0 : i32
    %c0_i32_1 = arith.constant 0 : i32
    return %c0_i32, %c0_i32_0 : i32, i32
  }
  func.func @transform_11(%arg0: i32) -> (i32, i32, i32) {
    %c0_i32 = arith.constant 0 : i32
    %c0_i32_0 = arith.constant 0 : i32
    %c0_i32_1 = arith.constant 0 : i32
    return %arg0, %c0_i32, %c0_i32_0 : i32, i32, i32
  }
}

</mosaic_0001>

<bundles_post_ra>
// kernel: attention.1
= control target key start
LH: loop header
LB: loop body
LE: loop exit
PB: predicated region body
PF: predicated region fallthrough
CT: control target
= control target key end

     0   :  { %s2253_s0 = inlined_call_operand.vmem [shape: f32[2,8,32], index: 0, kind: input, shape index: {}]   ;;  %s2254_s1 = inlined_call_operand.vmem [shape: f32[2,64,32], index: 1, kind: input, shape index: {}]   ;;  %s2255_s2 = inlined_call_operand.vmem [shape: f32[2,64,32], index: 2, kind: input, shape index: {}]   ;;  %s2256_s3 = inlined_call_operand.vmem [shape: f32[32,16], index: 3, kind: input, shape index: {}]   ;;  %s2257_s4 = inlined_call_operand.vmem [shape: f32[1,16], index: 4, kind: input, shape index: {}]   ;;  %s2258_s5 = inlined_call_operand.vmem [shape: f32[32,16], index: 5, kind: input, shape index: {}]   ;;  %s2259_s6 = inlined_call_operand.vmem [shape: f32[1,16], index: 6, kind: input, shape index: {}]   ;;  %s2260_s7 = inlined_call_operand.vmem [shape: f32[32,16], index: 7, kind: input, shape index: {}]   ;;  %s2261_s8 = inlined_call_operand.vmem [shape: f32[1,16], index: 8, kind: input, shape index: {}]   ;;  %s2262_s9 = inlined_call_operand.vmem [shape: f32[16,32], index: 9, kind: input, shape index: {}]   ;;  %s2263_s10 = inlined_call_operand.vmem [shape: f32[1,32], index: 10, kind: input, shape index: {}]   ;;  %s2264_s11 = inlined_call_operand.hbm [shape: f32[2,8,32], index: 11, kind: output, shape index: {}]  }
   0x1   :  { %2267 = sst [smem:[#allocation5_spill]] %s2253_s0 }
   0x2   :  { %2268 = sst [smem:[#allocation6_spill]] %s2254_s1 }
   0x3   :  { %2269 = sst [smem:[#allocation7_spill]] %s2256_s3 }
   0x4   :  { %16 = vsyncpa [#allocation3], 0 }
   0x5   :  { %18 = vsyncpa [#allocation3 + $0x1], 0  ;;  %s1959_s17 = smov 0   ;;  %s1961_s18 = smov 0  }
   0x6   :  { %s1963_s19 = smov 0   ;;  %s1965_s20 = smov 0  }
   0x7 LB: > { %s1980_s21 = sadd.s32 4294967295, %s1891_s20   ;;  %s1396_s22 = sadd.s32 4294967294, %s1891_s20   ;;  %s1891_s20 = sphi %s1965_s20, %s2281_s20   ;;  %s1887_s19 = sphi %s1963_s19, %s2280_s19   ;;  %s1883_s18 = sphi %s1961_s18, %s2279_s18   ;;  %s1879_s17 = sphi %s1959_s17, %s2278_s17  }
   0x8   : > { %s1984_s23 = sadd.s32 1, %s1891_s20   ;;  %s277_s24 = sadd.s32 1, %s1887_s19 }
   0x9   : > { %s274_s25 = ssub.s32 %s1891_s20, %s1984_s23  ;;  %p287_p0 = scmp.ne.s32.totalorder %s1887_s19, %s1883_s18 }
   0xa   : > { %p275_p1 = scmp.eq.s32.totalorder %s274_s25, 0  ;;  %p288_p2 = scmp.eq.s32.totalorder %s1980_s21, 1 }
   0xb   : > { %p293_p3 = scmp.ne.s32.totalorder %s1883_s18, %s1879_s17  ;;  %p294_p4 = scmp.eq.s32.totalorder %s1396_s22, 1 }
   0xc   : > { %s1995_s26 = scalar_select %p275_p1, %s1887_s19, %s277_s24  }
   0xd   : > { %p1997_p5 = por %p288_p2, %p287_p0  ;;  %p2001_p6 = por %p294_p4, %p293_p3 }
   0xe   : > { %p1399_p7 = scmp.ge.s32.totalorder %s1891_s20, 1  ;;  %p359_p8 = scmp.lt.s32.totalorder %s1891_s20, 3 }
  0x10   : > { %p360_p9 = pnand %p1399_p7, %p359_p8 }
  0x11   : > { %v525_v0 = vld [vmem:[%s2258_s5] sm:$0xff] (!%p360_p9)  ;;  %v526_v1 = vld [vmem:[%s2258_s5 + $0x8] sm:$0xff] (!%p360_p9)  ;;  %v527_v2 = vld [vmem:[%s2258_s5 + $0x10] sm:$0xff] (!%p360_p9)  ;;  %p408_p10 = scmp.lt.s32.totalorder (!%p360_p9), %s1980_s21, 1  ;;  %v1893_v5 = vmov (!%p360_p9), 0.0|0.0   ;;  %s2272_s3 = sld [smem:[#allocation7_spill]] (!%p360_p9) }
  0x12   : > { %363 = sbr.rel (%p360_p9) target bundleno = 1925 (0x785), region = 64  ;;  %v1662_v3 = vpack.c.bf16 (!%p360_p9), %v526_v1, %v525_v0  ;;  %v528_v4 = vld [vmem:[%s2258_s5 + $0x18] sm:$0xff] (!%p360_p9)  ;;  %1656 = vmatprep.subr.bf16.mxu0 (!%p360_p9), %v1893_v5  ;;  %vm1894_vm0 = vmmov (!%p360_p9), 0   ;;  %v1895_v12 = vmov (!%p360_p9), 0.0   ;;  %vm450_vm1 = vcmask (!%p360_p9), 261120   ;;  %s2273_s1 = sld [smem:[#allocation6_spill]] (!%p360_p9) }
  0x13   : > { %v1666_v8 = vpack.c.bf16 (!%p360_p9), %v528_v4, %v527_v2  ;;  %1530 = vmatprep.mubr.msk.f32.mxu0 (!%p360_p9), %vm1894_vm0, %v1895_v12  ;;  %s2274_s0 = sld [smem:[#allocation5_spill]] (!%p360_p9)  ;;  %v1408_v23 = vld [vmem:[%s2259_s6] ss:$0 sm:$0xff] (!%p360_p9)  ;;  %vm805_vm2 = vcmask (!%p360_p9), 64512   ;;  %s2265_s25 = smov (!%p360_p9), 120   ;;  %v666_v55 = vld [vmem:[%s2260_s7 + $0x8] sm:$0xff] (!%p360_p9) }
  0x14   : > { %1663 = vmatprep.subr.bf16.mxu1 (!%p360_p9), %v1662_v3  ;;  %vm2066_vm3 = vmpackc.low (!%p360_p9), %vm805_vm2, %vm805_vm2  ;;  %v1406_v43 = vld [vmem:[%s2257_s4] ss:$0 sm:$0xff] (!%p360_p9)  ;;  %v667_v56 = vld [vmem:[%s2260_s7 + $0x10] sm:$0xff] (!%p360_p9)  ;;  %vm903_vm4 = vcmask (!%p360_p9), 523264   ;;  %s1897_s14 = smov (!%p360_p9), 8   ;;  %vm1224_vm5 = vcmask (!%p360_p9), 130048  }
  0x15   : > { %1665 = vmatpush3.bf16.msra.mxu1 (!%p360_p9), %v1662_v3  ;;  %v665_v54 = vld [vmem:[%s2260_s7] sm:$0xff] (!%p360_p9)  ;;  %v668_v58 = vld [vmem:[%s2260_s7 + $0x18] sm:$0xff] (!%p360_p9) }
  0x16   : > { %1667 = vmatprep.subr.bf16.mxu1 (!%p360_p9), %v1666_v8  ;;  %v1670_v57 = vpack.c.bf16 (!%p360_p9), %v666_v55, %v665_v54  ;;  %v1674_v60 = vpack.c.bf16 (!%p360_p9), %v668_v58, %v667_v56 }
  0x17   : > { %v439_v6 = vld [vmem:[%s2272_s3] sm:$0xff] (!%p360_p9)  ;;  %v440_v7 = vld [vmem:[%s2272_s3 + $0x8] sm:$0xff] (!%p360_p9)  ;;  %v441_v10 = vld [vmem:[%s2272_s3 + $0x10] sm:$0xff] (!%p360_p9) }
  0x18   : > { %v1657_v9 = vpack.c.bf16 (!%p360_p9), %v440_v7, %v439_v6  ;;  %v442_v11 = vld [vmem:[%s2272_s3 + $0x18] sm:$0xff] (!%p360_p9)  ;;  %s2277_s3 = smov (!%p360_p9), 120  }
  0x19   : > { %s2028_s12 = scalar_select %p408_p10, %s1980_s21, 1  ;;  %v1660_v13 = vpack.c.bf16 %v442_v11, %v441_v10  ;;  %1669 = vmatpush3.bf16.msra.mxu1 %v1666_v8  ;;  %v1417_v8 = vld [vmem:[%s2261_s8] ss:$0 sm:$0xff] }
  0x1a   : > { %1658 = vmatpush3.bf16.msra.mxu0 %v1657_v9  ;;  %1678 = vmatprep.subr.bf16.mxu1 %v1893_v5 }
  0x1b   : > { %s1452_s22 = sshll.u32 %s2028_s12, 6  ;;  %s1401_s24 = sshll.u32 %s2028_s12, 3  ;;  %1659 = vmatprep.subr.bf16.mxu0 %v1893_v5 }
  0x1c   : > { %s416_s30 = scalar_lea.vmem %s2273_s1, %s1452_s22  ;;  %s411_s15 = scalar_lea.vmem %s2274_s0, %s1401_s24 }
  0x1d   : > { %v423_v14 = vld [vmem:[%s416_s30] sm:$0xff]  ;;  %v424_v15 = vld [vmem:[%s416_s30 + $0x8] sm:$0xff]  ;;  %v425_v17 = vld [vmem:[%s416_s30 + $0x10] sm:$0xff] }
  0x1e   : > { %1541 = vmatprep.mubr.msk.f32.mxu1 %vm450_vm1, %v423_v14  ;;  %1661 = vmatpush3.bf16.msra.mxu0 %v1660_v13  ;;  %v422_v16 = vld [vmem:[%s411_s15] sm:$0xff]  ;;  %v426_v18 = vld [vmem:[%s416_s30 + $0x18] sm:$0xff]  ;;  %v428_v20 = vld [vmem:[%s416_s30 + $0x28] sm:$0xff]  ;;  %s421_s15 = scalar_lea.vmem %s2255_s2, %s1452_s22 }
  0x1f   : > { %1542 = vmatmul.mubr.msk.f32.vlgmr.msra.gmra.mrb[0].mxu1 %vm450_vm1, %v424_v15  ;;  %v427_v19 = vld [vmem:[%s416_s30 + $0x20] sm:$0xff]  ;;  %v429_v21 = vld [vmem:[%s416_s30 + $0x30] sm:$0xff]  ;;  %v430_v22 = vld [vmem:[%s416_s30 + $0x38] sm:$0xff]  ;;  %1671 = vmatprep.subr.bf16.mxu0 %v1670_v57  ;;  %s1449_s30 = sshll.u32 %s1980_s21, 7  ;;  %s1898_s21 = smov [#allocation2]  }
  0x20   : > { %1544 = vmatprep.mubr.msk.f32.mxu1 %vm450_vm1, %v425_v17  ;;  %v431_v59 = vld [vmem:[%s421_s15] sm:$0xff]  ;;  %v432_v61 = vld [vmem:[%s421_s15 + $0x8] sm:$0xff]  ;;  %v433_v62 = vld [vmem:[%s421_s15 + $0x10] sm:$0xff]  ;;  %s2210_s22 = scalar_lea.hbm %s2264_s11, %s1449_s30 }
  0x21   : > { %1531 = vmatmul.mubr.msk.f32.vlgmr.msra.gmra.mrb[0].mxu0 %vm450_vm1, %v422_v16  ;;  %v434_v63 = vld [vmem:[%s421_s15 + $0x18] sm:$0xff]  ;;  %v435_v0 = vld [vmem:[%s421_s15 + $0x20] sm:$0xff]  ;;  %v436_v1 = vld [vmem:[%s421_s15 + $0x28] sm:$0xff] }
  0x22   : > { %1561 = vmatprep.mubr.msk.f32.mxu0 %vm450_vm1, %v431_v59  ;;  %1673 = vmatpush3.bf16.msra.mxu0 %v1670_v57  ;;  %v437_v2 = vld [vmem:[%s421_s15 + $0x30] sm:$0xff]  ;;  %v438_v3 = vld [vmem:[%s421_s15 + $0x38] sm:$0xff]  ;;  %s405_s15 = sand.u32 1, %s1883_s18  }
  0x23   : > { %1545 = vmatmul.mubr.msk.f32.gmra.mrb[2].mxu1 %vm450_vm1, %v426_v18  ;;  %1675 = vmatprep.subr.bf16.mxu0 %v1674_v60  ;;  %s1400_s16 = sshll.u32 %s405_s15, 3 }
  0x24   : > { %1547 = vmatprep.mubr.msk.f32.mxu1 %vm450_vm1, %v427_v19  ;;  %s407_s0 = scalar_lea.vmem [#allocation2], %s1400_s16 }
  0x25   : > { %s1313_s1 = sshll.u32 %s407_s0, 4  ;;  %s2212_s1 = int_to_ptr.vmem [resolvable:$true] %s1313_s1 }
  0x26   : > { %1677 = vmatpush3.bf16.msra.mxu0 %v1674_v60  ;;  %s1829_s13 = scalar_lea.vmem %s2212_s1, 128 }
  0x27   : > { %1548 = vmatmul.mubr.msk.f32.gmra.mrb[4].mxu1 %vm450_vm1, %v428_v20  ;;  %1694 = vmatprep.subr.bf16.mxu0 %v1893_v5  ;;  %p1830_p11 = scmp.ne.s32.totalorder %s2212_s1, %s1829_s13 }
  0x28   : > { %1550 = vmatprep.mubr.msk.f32.mxu1 %vm450_vm1, %v429_v21 }
  0x29   : > { %1562 = vmatmul.mubr.msk.f32.vlgmr.msra.gmra.mrb[2].mxu0 %vm450_vm1, %v432_v61  ;;  %p1831_p12 = pnand %p1830_p11, %p1997_p5 }
  0x2a   : > { %1564 = vmatprep.mubr.msk.f32.mxu0 %vm450_vm1, %v433_v62 }
  0x2b   : > { %1551 = vmatmul.mubr.msk.f32.gmra.mrb[6].mxu1 %vm450_vm1, %v430_v22  ;;  %p1832_p13 = pneg %p1831_p12 }
  0x2c   : > { %1589 = vmatprep.mubr.msk.f32.mxu1 %vm1894_vm0, %v1895_v12 }
  0x2d   : > { %1565 = vmatmul.mubr.msk.f32.gmra.mrb[4].mxu0 %vm450_vm1, %v434_v63 }
  0x2e   : > { %1567 = vmatprep.mubr.msk.f32.mxu0 %vm450_vm1, %v435_v0 }
  0x31   : > { %1568 = vmatmul.mubr.msk.f32.gmra.mrb[6].mxu0 %vm450_vm1, %v436_v1 }
  0x32   : > { %1570 = vmatprep.mubr.msk.f32.mxu0 %vm450_vm1, %v437_v2 }
  0x35   : > { %1571 = vmatmul.mubr.msk.f32.gmra.mrb[8].mxu0 %vm450_vm1, %v438_v3 }
  0x36   : > { %1608 = vmatprep.mubr.msk.f32.mxu0 %vm1894_vm0, %v1895_v12 }
  0xf2   : > { %v1543_v24 = vpop.f32.mrb[0].mxu1 }
  0xf3   : > { %v632_v26 = vadd.f32 %v1543_v24, %v1408_v23  ;;  %v626_v27 = vpop.f32.mrb[1].mxu1 }
  0xf4   : > { %v520_v25 = vpop.f32.mrb[0].mxu0  ;;  %v627_v29 = vadd.f32 %v1408_v23, %v626_v27 }
  0xf5   : > { %v1532_v28 = vpop.f32.mrb[1].mxu0  ;;  %v521_v50 = vadd.f32 %v1406_v43, %v520_v25 }
  0xf6   : > { %v1679_v31 = vpack.c.bf16 %v632_v26, %v627_v29  ;;  %v1781_v32 = vpack.i.bf16 %v632_v26, %v627_v29  ;;  %v1546_v33 = vpop.f32.mrb[2].mxu1 }
  0xf7   : > { %v642_v34 = vadd.f32 %v1546_v33, %v1408_v23  ;;  %v636_v35 = vpop.f32.mrb[3].mxu1  ;;  %v524_v53 = vmul.f32 0.35355338, %v521_v50 }
  0xf8   : > { %1782 = vrot.lane.b32.xlu1 %v1781_v32, %s2265_s25  ;;  %1681 = vmatpush3.bf16.xpose.msk.msra.mxu1 %vm2066_vm3, %v1679_v31  ;;  %v637_v36 = vadd.f32 %v1408_v23, %v636_v35 }
  0xf9   : > { %1682 = vmatprep.subr.bf16.mxu1 %v1893_v5 }
  0xfa   : > { %v1786_v37 = vpack.i.bf16 %v642_v34, %v637_v36  ;;  %v1683_v38 = vpack.c.bf16 %v642_v34, %v637_v36  ;;  %v1549_v39 = vpop.f32.mrb[4].mxu1 }
  0xfb   : > { %v2074_v40 = vadd.f32 %v1549_v39, %v1408_v23  ;;  %v646_v41 = vpop.f32.mrb[5].mxu1 }
  0xfc   : > { %1787 = vrot.lane.b32.xlu1 %v1786_v37, %s2265_s25  ;;  %v2077_v42 = vadd.f32 %v1408_v23, %v646_v41  ;;  %v1563_v9 = vpop.f32.mrb[2].mxu0 }
  0xfd   : > { %v2132_v10 = vadd.f32 %v1563_v9, %v1417_v8  ;;  %v766_v11 = vpop.f32.mrb[3].mxu0 }
  0xfe   : > { %v1791_v44 = vpack.i.bf16 %v2074_v40, %v2077_v42  ;;  %v1687_v45 = vpack.c.bf16 %v2074_v40, %v2077_v42  ;;  %v1552_v46 = vpop.f32.mrb[6].mxu1  ;;  %v2134_v13 = vadd.f32 %v1417_v8, %v766_v11 }
  0xff   : > { %v662_v47 = vadd.f32 %v1552_v46, %v1408_v23  ;;  %v656_v48 = vpop.f32.mrb[7].mxu1 }
 0x100   : > { %1685 = vmatpush3.bf16.xpose.msk.msra.mxu1 %vm2066_vm3, %v1683_v38  ;;  %v657_v49 = vadd.f32 %v1408_v23, %v656_v48  ;;  %v1801_v14 = vpack.i.bf16 %v2132_v10, %v2134_v13  ;;  %v1695_v15 = vpack.c.bf16 %v2132_v10, %v2134_v13  ;;  %v1566_v16 = vpop.f32.mrb[4].mxu0 }
 0x101   : > { %1686 = vmatprep.subr.bf16.mxu1 %v1893_v5  ;;  %v2140_v17 = vadd.f32 %v1566_v16, %v1417_v8  ;;  %v776_v18 = vpop.f32.mrb[5].mxu0 }
 0x102   : > { %v1796_v51 = vpack.i.bf16 %v662_v47, %v657_v49  ;;  %v1691_v52 = vpack.c.bf16 %v662_v47, %v657_v49  ;;  %v2142_v19 = vadd.f32 %v1417_v8, %v776_v18  ;;  %1696 = vmatpush3.bf16.msra.mxu0 %v1695_v15 }
 0x103   : > { %1697 = vmatprep.subr.bf16.mxu0 %v1893_v5 }
 0x104   : > { %1797 = vrot.lane.b32.xlu1 %v1796_v51, %s2265_s25  ;;  %v1806_v20 = vpack.i.bf16 %v2140_v17, %v2142_v19  ;;  %v1698_v21 = vpack.c.bf16 %v2140_v17, %v2142_v19  ;;  %v1569_v22 = vpop.f32.mrb[6].mxu0 }
 0x105   : > { %v2149_v23 = vadd.f32 %v1569_v22, %v1417_v8  ;;  %v786_v24 = vpop.f32.mrb[7].mxu0 }
 0x106   : > { %v787_v25 = vadd.f32 %v1417_v8, %v786_v24  ;;  %1699 = vmatpush3.bf16.msra.mxu0 %v1698_v21 }
 0x107   : > { %1700 = vmatprep.subr.bf16.mxu0 %v1893_v5 }
 0x108   : > { %1689 = vmatpush3.bf16.xpose.msk.msra.mxu1 %vm2066_vm3, %v1687_v45  ;;  %988 = vrot.lane.b32.xlu1 %v524_v53, %s2265_s25  ;;  %v1811_v26 = vpack.i.bf16 %v2149_v23, %v787_v25  ;;  %v1701_v27 = vpack.c.bf16 %v2149_v23, %v787_v25  ;;  %v1572_v28 = vpop.f32.mrb[8].mxu0  ;;  %s1300_s25 = scalar_lea.sflag [#allocation3], %s405_s15 }
 0x109   : > { %1690 = vmatprep.subr.bf16.mxu1 %v1893_v5  ;;  %v802_v29 = vadd.f32 %v1572_v28, %v1417_v8  ;;  %v796_v31 = vpop.f32.mrb[9].mxu0 }
 0x10a   : > { %v797_v32 = vadd.f32 %v1417_v8, %v796_v31  ;;  %1702 = vmatpush3.bf16.msra.mxu0 %v1701_v27  ;;  %v1216_v27 = vld [vmem:[%s2262_s9 + $0x8] sm:$0xff] }
 0x10b   : > { %1703 = vmatprep.subr.bf16.mxu0 %v1893_v5 }
 0x10c   : > { %v1816_v33 = vpack.i.bf16 %v802_v29, %v797_v32  ;;  %v1704_v34 = vpack.c.bf16 %v802_v29, %v797_v32 }
 0x10e   : > { %1705 = vmatpush3.bf16.msra.mxu0 %v1704_v34 }
 0x10f   : > { %1706 = vmatprep.subr.bf16.mxu0 %v1893_v5 }
 0x110   : > { %1693 = vmatpush3.bf16.xpose.msk.msra.mxu1 %vm2066_vm3, %v1691_v52 }
 0x111   : > { %1722 = vmatprep.subr.bf16.mxu1 %v1893_v5 }
 0x117   : > { %1590 = vmatmul.mubr.msk.f32.vlgmr.msra.gmra.mrb[8].mxu1 %vm805_vm2, %v524_v53 }
 0x118   : > { %1646 = vmatprep.mubr.msk.f32.mxu1 %vm1894_vm0, %v1895_v12 }
 0x16a   : > { %v1783_v43 = vpop.permute.xlu1 %1782 }
 0x16b   : > { %v1785_v45 = vunpack.i.h.bf16 %v1783_v43  ;;  %v1784_v46 = vunpack.i.l.bf16 %v1783_v43 }
 0x16d   : > { %v1707_v49 = vpack.c.bf16 %v1785_v45, %v1784_v46 }
 0x16e   : > { %v1788_v50 = vpop.permute.xlu1 %1787 }
 0x16f   : > { %v1790_v40 = vunpack.i.h.bf16 %v1788_v50  ;;  %v1789_v42 = vunpack.i.l.bf16 %v1788_v50 }
 0x176   : > { %v1798_v55 = vpop.permute.xlu1 %1797 }
 0x177   : > { %v1800_v56 = vunpack.i.h.bf16 %v1798_v55  ;;  %v1799_v57 = vunpack.i.l.bf16 %v1798_v55 }
 0x179   : > { %v1719_v58 = vpack.c.bf16 %v1800_v56, %v1799_v57 }
 0x17a   : > { %v989_v59 = vpop.permute.xlu1 %988 }
 0x1ea   : > { %v899_v4 = vpop.f32.mrb[8].mxu1 }
 0x1eb   : > { %v1591_v6 = vpop.f32.mrb[9].mxu1  ;;  %v904_v7 = vsel %vm903_vm4, %v899_v4, -inf }
 0x1ec   : > { %905 = vmax.xlane.f32.xlu0 %v904_v7 }
 0x279   : > { %v906_v35 = vpop.xlane.xlu0 %905 }
 0x27a   : > { %v907_v36 = vsub.f32 %v899_v4, %v906_v35 }
 0x27c   : > { %v908_v37 = vmul.f32 1.442695, %v907_v36 }
 0x27e   : > { %1821 = vpow2.f32 %v908_v37 }
 0x288   : > { %v1822_v38 = vpop.eup %1821 }
 0x289   : > { %v910_v39 = vsel %vm903_vm4, %v1822_v38, 0.0 }
 0x28a   : > { %911 = vadd.xlane.f32.xlu0 %v910_v39 }
 0x2a0   : > { %1792 = vrot.lane.b32.xlu0 %v1791_v44, %s2277_s3  ;;  %v1711_v44 = vpack.c.bf16 %v1790_v40, %v1789_v42 }
 0x317   : > { %v912_v41 = vpop.xlane.xlu0 %911 }
 0x318   : > { %1823 = vrcp.f32 %v912_v41 }
 0x31b   : > { %v1793_v51 = vpop.permute.xlu0 %1792 }
 0x31c   : > { %v1795_v52 = vunpack.i.h.bf16 %v1793_v51  ;;  %v1794_v53 = vunpack.i.l.bf16 %v1793_v51 }
 0x31e   : > { %v1715_v54 = vpack.c.bf16 %v1795_v52, %v1794_v53 }
 0x322   : > { %v1824_v47 = vpop.eup %1823 }
 0x323   : > { %v914_v48 = vmul.f32 %v1824_v47, %v1822_v38 }
 0x325   : > { %1609 = vmatmul.mubr.msk.f32.vlgmr.msra.gmra.mrb[10].mxu0 %vm903_vm4, %v914_v48 }
 0x326   : > { %1709 = vmatpush3.bf16.xpose.msk.msra.mxu0 %vm2066_vm3, %v1707_v49  ;;  %1627 = vmatprep.mubr.msk.f32.mxu0 %vm1894_vm0, %v1895_v12 }
 0x327   : > { %1710 = vmatprep.subr.bf16.mxu0 %v1893_v5 }
 0x32e   : > { %1713 = vmatpush3.bf16.xpose.msk.msra.mxu0 %vm2066_vm3, %v1711_v44 }
 0x32f   : > { %1714 = vmatprep.subr.bf16.mxu0 %v1893_v5 }
 0x336   : > { %1717 = vmatpush3.bf16.xpose.msk.msra.mxu0 %vm2066_vm3, %v1715_v54 }
 0x337   : > { %1718 = vmatprep.subr.bf16.mxu0 %v1893_v5 }
 0x33e   : > { %1721 = vmatpush3.bf16.xpose.msk.msra.mxu0 %vm2066_vm3, %v1719_v58 }
 0x345   : > { %1628 = vmatmul.mubr.msk.f32.vlgmr.msra.gmra.mrb[12].mxu0 %vm805_vm2, %v989_v59 }
 0x3f8   : > { %v984_v60 = vpop.f32.mrb[10].mxu0 }
 0x3f9   : > { %v1610_v61 = vpop.f32.mrb[11].mxu0 }
 0x418   : > { %v1090_v62 = vpop.f32.mrb[12].mxu0 }
 0x419   : > { %v1629_v63 = vpop.f32.mrb[13].mxu0  ;;  %v1094_v0 = vsel %vm903_vm4, %v1090_v62, -inf }
 0x41a   : > { %1095 = vmax.xlane.f32.xlu1 %v1094_v0 }
 0x42b   : > { %1802 = vrot.lane.b32.xlu1 %v1801_v14, %s2277_s3 }
 0x42f   : > { %1812 = vrot.lane.b32.xlu1 %v1811_v26, %s2277_s3  ;;  %v1215_v26 = vld [vmem:[%s2262_s9] sm:$0xff] }
 0x430   : > { %v1735_v28 = vpack.c.bf16 %v1216_v27, %v1215_v26 }
 0x433   : > { %1817 = vrot.lane.b32.xlu1 %v1816_v33, %s2277_s3 }
 0x4a7   : > { %v1096_v30 = vpop.xlane.xlu1 %1095 }
 0x4a8   : > { %v1097_v1 = vsub.f32 %v1090_v62, %v1096_v30 }
 0x4aa   : > { %v1098_v2 = vmul.f32 1.442695, %v1097_v1 }
 0x4ab   : > { %v1803_v3 = vpop.permute.xlu1 %1802 }
 0x4ac   : > { %1825 = vpow2.f32 %v1098_v2  ;;  %v1805_v4 = vunpack.i.h.bf16 %v1803_v3  ;;  %v1804_v6 = vunpack.i.l.bf16 %v1803_v3 }
 0x4ae   : > { %v1723_v7 = vpack.c.bf16 %v1805_v4, %v1804_v6 }
 0x4af   : > { %v1813_v11 = vpop.permute.xlu1 %1812 }
 0x4b0   : > { %1724 = vmatpush3.bf16.msra.mxu1 %v1723_v7  ;;  %v1815_v16 = vunpack.i.h.bf16 %v1813_v11  ;;  %v1814_v18 = vunpack.i.l.bf16 %v1813_v11 }
 0x4b1   : > { %1725 = vmatprep.subr.bf16.mxu1 %v1893_v5 }
 0x4b2   : > { %v1729_v23 = vpack.c.bf16 %v1815_v16, %v1814_v18 }
 0x4b3   : > { %v1818_v22 = vpop.permute.xlu1 %1817 }
 0x4b4   : > { %v1820_v24 = vunpack.i.h.bf16 %v1818_v22  ;;  %v1819_v25 = vunpack.i.l.bf16 %v1818_v22 }
 0x4b6   : > { %v1826_v8 = vpop.eup %1825  ;;  %v1732_v19 = vpack.c.bf16 %v1820_v24, %v1819_v25 }
 0x4b7   : > { %v1100_v9 = vsel %vm903_vm4, %v1826_v8, 0.0 }
 0x4b8   : > { %1101 = vadd.xlane.f32.xlu0 %v1100_v9 }
 0x4ce   : > { %1807 = vrot.lane.b32.xlu0 %v1806_v20, %s2277_s3 }
 0x545   : > { %v1102_v10 = vpop.xlane.xlu0 %1101 }
 0x546   : > { %1827 = vrcp.f32 %v1102_v10 }
 0x549   : > { %v1808_v13 = vpop.permute.xlu0 %1807 }
 0x54a   : > { %v1810_v14 = vunpack.i.h.bf16 %v1808_v13  ;;  %v1809_v15 = vunpack.i.l.bf16 %v1808_v13 }
 0x54c   : > { %v1726_v21 = vpack.c.bf16 %v1810_v14, %v1809_v15 }
 0x54e   : > { %1727 = vmatpush3.bf16.msra.mxu1 %v1726_v21 }
 0x54f   : > { %1728 = vmatprep.subr.bf16.mxu1 %v1893_v5 }
 0x550   : > { %v1828_v17 = vpop.eup %1827 }
 0x551   : > { %v1104_v20 = vmul.f32 %v1828_v17, %v1826_v8 }
 0x552   : > { %1730 = vmatpush3.bf16.msra.mxu1 %v1729_v23 }
 0x553   : > { %1731 = vmatprep.subr.bf16.mxu1 %v1893_v5 }
 0x556   : > { %1733 = vmatpush3.bf16.msra.mxu1 %v1732_v19 }
 0x557   : > { %1734 = vmatprep.subr.bf16.mxu1 %v1893_v5 }
 0x559   : > { %1647 = vmatmul.mubr.msk.f32.vlgmr.msra.gmra.mrb[10].mxu1 %vm903_vm4, %v1104_v20 }
 0x55a   : > { %1653 = vmatprep.mubr.msk.f32.mxu1 %vm1894_vm0, %v1895_v12  ;;  %1736 = vmatpush3.bf16.msra.mxu1 %v1735_v28  ;;  %v1446_v12 = vld [vmem:[%s2263_s10] ss:$0 sm:$0xff] }
 0x62c   : > { %v1206_v29 = vpop.f32.mrb[10].mxu1 }
 0x62d   : > { %1211 = vrot.lane.b32.xlu1 %v1206_v29, %s1897_s14  ;;  %v1648_v5 = vpop.f32.mrb[11].mxu1  ;;  %s1833_s14 = sshll.u32 %s1898_s21, 4  ;;  %s1834_s14 = int_to_ptr.vmem [resolvable:$false] %s1833_s14 }
 0x62e   : > { %s1835_s16 = scalar_lea.vmem %s1834_s14, 256  ;;  %p1836_p0 = scmp.lt.s32.totalorder %s2212_s1, %s1834_s14 }
 0x62f   : > { %p1837_p1 = scmp.lt.s32.totalorder %s1835_s16, %s1829_s13 }
 0x631   : > { %p1838_p2 = por %p1837_p1, %p1836_p0 }
 0x633   : > { %p1839_p3 = pnand %p1838_p2, %p1832_p13 }
 0x69f   : > { %v1212_v31 = vpop.permute.xlu1 %1211 }
 0x6a0   : > { %v1214_v32 = vsel %vm805_vm2, %v984_v60, %v1212_v31 }
 0x6a1   : > { %1654 = vmatmul.mubr.msk.f32.vlgmr.msra.gmra.mrb[12].mxu1 %vm1224_vm5, %v1214_v32 }
 0x774   : > { %v1294_v33 = vpop.f32.mrb[12].mxu1 }
 0x775   : > { %v1295_v34 = vadd.f32 %v1446_v12, %v1294_v33  ;;  %v1655_v35 = vpop.f32.mrb[13].mxu1 }
 0x777   : > { %1298 = vst.msk [vmem:[%s407_s0] sm:$0xff] %vm450_vm1, %v1295_v34 }
 0x778   : > { %1842 = shalt.err (!%p1839_p3)
}
 0x779   : > { %s1843_s15 = scalar_lea.hbm %s2210_s22, 128  ;;  %s1847_s30 = scalar_lea.hbm %s2264_s11, 256 }
 0x77a   : > { %p1844_p4 = scmp.ne.s32.totalorder %s2210_s22, %s1843_s15  ;;  %p1848_p9 = scmp.lt.u32.totalorder %s2210_s22, %s2264_s11 }
 0x77b   : > { %p1849_p10 = scmp.lt.u32.totalorder %s1847_s30, %s1843_s15  ;;  %p1851_p12 = scmp.lt.u32.totalorder %s1843_s15, %s2210_s22 }
 0x77c   : > { %p1845_p7 = pnand %p1844_p4, %p1997_p5 }
 0x77d   : > { %p1850_p11 = por %p1849_p10, %p1848_p9 }
 0x77e   : > { %p1846_p8 = pneg %p1845_p7 }
 0x77f   : > { %p1852_p13 = por %p1851_p12, %p1850_p11 }
 0x781   : > { %p1853_p0 = pnand %p1852_p13, %p1846_p8 }
 0x783   : > { %1856 = shalt.err (!%p1853_p0)
}
 0x784   : > { %1737 = dma.vmem_to_hbm [thread:$0]  (%p1997_p5), %s2212_s1, 128, %s2210_s22, %s1300_s25  }
 0x785 PF: > { %p1743_p1 = scmp.ge.s32.totalorder %s1891_s20, 2  ;;  %s1325_s12 = sand.u32 1, %s1879_s17  }
 0x786   : > { %s1326_s13 = scalar_lea.sflag [#allocation3], %s1325_s12 }
 0x787   : > { %p1740_p2 = pnand %p1743_p1, %p2001_p6 }
 0x789   : > { %1874 = dma.done.wait (!%p1740_p2), %s1326_s13, 128  }
 0x78a   : > { %1876 = vsyncadd (!%p1740_p2), %s1326_s13, 4294967168  ;;  %p21_p3 = scmp.ge.s32.totalorder %s1984_s23, 4   ;;  %s2278_s17 = smov %s1883_s18 }
 0x78b   : > { %s2279_s18 = smov %s1887_s19  ;;  %s2280_s19 = smov %s1995_s26 }
 0x78c   : > { %s2281_s20 = smov %s1984_s23  ;;  %23 = sbr.rel (!%p21_p3) target bundleno = 7 (0x7), region = 105 }
 0x793   :  { %1331 = vsyncpa [#allocation3], 1 }
 0x794   :  { %1333 = vsyncpa [#allocation3 + $0x1], 1 }

</bundles_post_ra>
